<compile_context>
chip_gen: v7x
topology: tpu7x:2x2x1
jax: 0.10.0
libtpu: 0.0.40
codegen_flags: <defaults>
</compile_context>

<pallas_src>
import math
import numpy as np
import jax
import jax.numpy as jnp
from jax.experimental import pallas as pl
from jax.experimental.pallas import tpu as pltpu  # noqa: F401  (tuning hooks if gridded/stacked later)

D_MODEL = 32
N_HEADS = 4
HEAD_DIM = D_MODEL // N_HEADS       # 8
SEQ = 8
BATCH = 2
TOKENS = SEQ * BATCH                # 16   (row t = s*B + b)
NROWS = N_HEADS * TOKENS            # 64   head-stacked attention rows (n = h*T + t)
EPS = 1e-5                          # nn.LayerNorm default

# ---- packed parameter slab layout: (P_ROWS, 128) f32, sections 8-row aligned ----
R_WQKV = 0            # rows   0..31 : in_proj_weight.T   (32, 96) in lanes 0:96, rest 0
R_WO   = 32           # rows  32..63 : out_proj.weight.T  (32, 32) in lanes 0:32
R_W1   = 64           # rows  64..95 : ff1.weight.T       (32,128)
R_W2   = 96           # rows  96..223: ff2.weight.T       (128,32) in lanes 0:32
R_VEC  = 224          # rows 224..231: bqkv, bo, g1, be1, bf1, bf2, g2, be2 (one per row)
P_ROWS = 232          # multiple of 8


def _layer_norm(x, gamma, beta):
    mean = jnp.mean(x, axis=-1, keepdims=True)
    var = jnp.mean((x - mean) ** 2, axis=-1, keepdims=True)   # biased, like PyTorch
    return (x - mean) * jax.lax.rsqrt(var + EPS) * gamma + beta


def transformer_block_kernel(x_ref, p_ref, o_ref):
    D, H, Hd, T, N = D_MODEL, N_HEADS, HEAD_DIM, TOKENS, NROWS

    x = x_ref[...]                                             # (T, D), row t = s*B + b

    # ---- fused QKV projection; RHS is the full 128-lane section (cols 96:128 zero) ----
    qkv = (jnp.dot(x, p_ref[R_WQKV:R_WQKV + D, :],
                   preferred_element_type=jnp.float32)
           + p_ref[R_VEC:R_VEC + 1, :])                        # (T, 128) = [q | k | v | 0]

    # ---- head-stack into 2-D (H*T, Hd): the ONLY row reshuffle in the kernel ----
    def stack_heads(base):
        return jnp.concatenate(
            [qkv[:, base + h * Hd: base + (h + 1) * Hd] for h in range(H)], axis=0)

    q = stack_heads(0)          # (64, 8)
    k = stack_heads(D)          # (64, 8)
    v = stack_heads(2 * D)      # (64, 8)

    # ---- one (64,64) score matmul + constant block-diag(head) x stripe(batch) mask ----
    scores = jnp.einsum("nd,md->nm", q, k,
                        preferred_element_type=jnp.float32) * (1.0 / math.sqrt(Hd))

    t_shift = T.bit_length() - 1          # log2(TOKENS) == 4   (T is a power of 2)
    b_bits = BATCH - 1                    # == 1                (B is a power of 2)
    ri = jax.lax.broadcasted_iota(jnp.int32, (N, N), 0)
    ci = jax.lax.broadcasted_iota(jnp.int32, (N, N), 1)
    valid = ((ri >> t_shift) == (ci >> t_shift)) & ((ri & b_bits) == (ci & b_bits))
    scores = scores + jnp.where(valid, 0.0, -1e30)

    # ---- one softmax over the whole (64,64); exact reciprocal (correctness review) ----
    scores = scores - jnp.max(scores, axis=-1, keepdims=True)
    e = jnp.exp(scores)
    wgt = e * pl.reciprocal(jnp.sum(e, axis=-1, keepdims=True), approx=False)

    av = jnp.dot(wgt, v, preferred_element_type=jnp.float32)   # (64, 8)

    # ---- merge heads back to (T, D) and apply the output projection ----
    attn = jnp.concatenate([av[h * T:(h + 1) * T, :] for h in range(H)], axis=1)
    attn = (jnp.dot(attn, p_ref[R_WO:R_WO + D, :D],
                    preferred_element_type=jnp.float32)
            + p_ref[R_VEC + 1:R_VEC + 2, :D])

    # ---- residual + norm1 ----
    x1 = _layer_norm(x + attn,
                     p_ref[R_VEC + 2:R_VEC + 3, :D],
                     p_ref[R_VEC + 3:R_VEC + 4, :D])

    # ---- feed-forward: Linear(D,4D) -> ReLU -> Linear(4D,D) for all tokens at once ----
    h1 = (jnp.dot(x1, p_ref[R_W1:R_W1 + D, :],
                  preferred_element_type=jnp.float32)
          + p_ref[R_VEC + 4:R_VEC + 5, :])                     # (T, 4D)
    h1 = jnp.maximum(h1, 0.0)
    ff = (jnp.dot(h1, p_ref[R_W2:R_W2 + 4 * D, :D],
                  preferred_element_type=jnp.float32)
          + p_ref[R_VEC + 5:R_VEC + 6, :D])                    # (T, D)

    # ---- residual + norm2 ----
    y = _layer_norm(x1 + ff,
                    p_ref[R_VEC + 6:R_VEC + 7, :D],
                    p_ref[R_VEC + 7:R_VEC + 8, :D])

    o_ref[...] = y                                             # (T, D)


def pack_params(params):
    """Pack the 12 weight/bias tensors into one 128-lane f32 slab (build once, reuse)."""
    D = D_MODEL

    def padded(mat, rows):
        out = jnp.zeros((rows, 128), jnp.float32)
        return out.at[:mat.shape[0], :mat.shape[1]].set(mat.astype(jnp.float32))

    def vec_row(v):
        return padded(v.reshape(1, -1), 1)

    slab = jnp.concatenate([
        padded(params["in_proj_weight"].T, D),       # rows   0..31
        padded(params["out_proj_weight"].T, D),      # rows  32..63
        padded(params["ff1_weight"].T, D),           # rows  64..95
        padded(params["ff2_weight"].T, 4 * D),       # rows  96..223
        vec_row(params["in_proj_bias"]),             # row 224
        vec_row(params["out_proj_bias"]),            # row 225
        vec_row(params["norm1_weight"]),             # row 226
        vec_row(params["norm1_bias"]),               # row 227
        vec_row(params["ff1_bias"]),                 # row 228
        vec_row(params["ff2_bias"]),                 # row 229
        vec_row(params["norm2_weight"]),             # row 230
        vec_row(params["norm2_bias"]),               # row 231
    ], axis=0)
    assert slab.shape == (P_ROWS, 128)
    return slab


@jax.jit
def transformer_block(x_sbd, packed_params):
    """x_sbd: (seq, batch, d_model) f32 (PyTorch MHA default layout);
    packed_params: (P_ROWS, 128) slab from pack_params()."""
    S, B, D = x_sbd.shape
    x2d = x_sbd.reshape(S * B, D)      # contiguous merge of leading dims: free, no transpose

    # No grid: everything (~120 KiB) fits VMEM; one invocation, 2 input DMAs, 1 output DMA.
    out2d = pl.pallas_call(
        transformer_block_kernel,
        out_shape=jax.ShapeDtypeStruct((S * B, D), jnp.float32),
    )(x2d, packed_params)

    return out2d.reshape(S, B, D)


# ---------------- pure-JAX reference (exact f32) ----------------
def _reference(x_sbd, p):
    hp = jax.lax.Precision.HIGHEST
    x = jnp.transpose(x_sbd, (1, 0, 2))  # (B, S, D)
    B, S, D = x.shape
    qkv = jnp.einsum("bsd,ed->bse", x, p["in_proj_weight"], precision=hp) + p["in_proj_bias"]
    q, k, v = jnp.split(qkv, 3, axis=-1)

    def split_heads(t):
        return jnp.transpose(t.reshape(B, S, N_HEADS, HEAD_DIM), (0, 2, 1, 3))

    qh, kh, vh = split_heads(q), split_heads(k), split_heads(v)
    scores = jnp.einsum("bhqd,bhkd->bhqk", qh, kh, precision=hp) / jnp.sqrt(jnp.float32(HEAD_DIM))
    w = jax.nn.softmax(scores, axis=-1)
    a = jnp.einsum("bhqk,bhkd->bhqd", w, vh, precision=hp)
    a = jnp.transpose(a, (0, 2, 1, 3)).reshape(B, S, D)
    a = jnp.einsum("bsd,ed->bse", a, p["out_proj_weight"], precision=hp) + p["out_proj_bias"]

    def ln(t, g, b):
        m = jnp.mean(t, -1, keepdims=True)
        v_ = jnp.mean((t - m) ** 2, -1, keepdims=True)
        return (t - m) / jnp.sqrt(v_ + EPS) * g + b

    x1 = ln(x + a, p["norm1_weight"], p["norm1_bias"])
    h1 = jax.nn.relu(jnp.einsum("bsd,ed->bse", x1, p["ff1_weight"], precision=hp) + p["ff1_bias"])
    ff = jnp.einsum("bse,de->bsd", h1, p["ff2_weight"], precision=hp) + p["ff2_bias"]
    x2 = ln(x1 + ff, p["norm2_weight"], p["norm2_bias"])
    return jnp.transpose(x2, (1, 0, 2))


def _init_params(key, d_model):
    ks = jax.random.split(key, 8)
    s = 0.05
    return {
        "in_proj_weight": s * jax.random.normal(ks[0], (3 * d_model, d_model), jnp.float32),
        "in_proj_bias": s * jax.random.normal(ks[1], (3 * d_model,), jnp.float32),
        "out_proj_weight": s * jax.random.normal(ks[2], (d_model, d_model), jnp.float32),
        "out_proj_bias": s * jax.random.normal(ks[3], (d_model,), jnp.float32),
        "ff1_weight": s * jax.random.normal(ks[4], (4 * d_model, d_model), jnp.float32),
        "ff1_bias": s * jax.random.normal(ks[5], (4 * d_model,), jnp.float32),
        "ff2_weight": s * jax.random.normal(ks[6], (d_model, 4 * d_model), jnp.float32),
        "ff2_bias": s * jax.random.normal(ks[7], (d_model,), jnp.float32),
        "norm1_weight": jnp.ones((d_model,), jnp.float32),
        "norm1_bias": jnp.zeros((d_model,), jnp.float32),
        "norm2_weight": jnp.ones((d_model,), jnp.float32),
        "norm2_bias": jnp.zeros((d_model,), jnp.float32),
    }


if __name__ == "__main__":
    key = jax.random.PRNGKey(0)
    k_x, k_p = jax.random.split(key)
    params = _init_params(k_p, D_MODEL)
    x = jax.random.normal(k_x, (SEQ, BATCH, D_MODEL), jnp.float32)  # (seq, batch, d_model)

    packed = jax.block_until_ready(pack_params(params))  # built once per weight set

    out = jax.block_until_ready(transformer_block(x, packed))
    ref = jax.block_until_ready(_reference(x, params))

    # Exact softmax reciprocal (approx=False) -> tolerance tightened from 1e-2 to 5e-3;
    # remaining margin only covers MXU f32 matmul-pass vs HIGHEST-precision XLA reference.
    np.testing.assert_allclose(np.asarray(out), np.asarray(ref), rtol=5e-3, atol=5e-3)
    assert out.shape == (SEQ, BATCH, D_MODEL)

    print("KERNEL_OK")
</pallas_src>

<mosaic_0001>
module attributes {stable_mosaic.version = 11 : i64} {
  func.func @transformer_block_kernel(%arg0: memref<16x32xf32, #tpu.memory_space<vmem>>, %arg1: memref<232x128xf32, #tpu.memory_space<vmem>>, %arg2: memref<16x32xf32, #tpu.memory_space<vmem>>) attributes {dimension_semantics = [], scalar_prefetch = 0 : i64, scratch_operands = 0 : i64, tpu.core_type = #tpu.core_type<tc>} {
    %c0 = arith.constant 0 : index
    %c0_0 = arith.constant 0 : index
    %0 = vector.load %arg0[%c0, %c0_0] : memref<16x32xf32, #tpu.memory_space<vmem>>, vector<16x32xf32>
    %c0_1 = arith.constant 0 : index
    %c0_2 = arith.constant 0 : index
    %1 = vector.load %arg1[%c0_1, %c0_2] : memref<232x128xf32, #tpu.memory_space<vmem>>, vector<32x128xf32>
    %cst = arith.constant dense<0.000000e+00> : vector<16x128xf32>
    %2 = tpu.matmul %0, %1, %cst {dimension_numbers = #tpu.dot_dimension_numbers<[1], [0], [0], [1], [0, 0, 1, 1], [], []>} : vector<16x32xf32>, vector<32x128xf32>, vector<16x128xf32> -> vector<16x128xf32>
    %c224 = arith.constant 224 : index
    %c0_3 = arith.constant 0 : index
    %3 = vector.load %arg1[%c224, %c0_3] : memref<232x128xf32, #tpu.memory_space<vmem>>, vector<1x128xf32>
    %4 = vector.broadcast %3 : vector<1x128xf32> to vector<16x128xf32>
    %5 = arith.addf %2, %4 : vector<16x128xf32>
    %6 = vector.extract_strided_slice %5 {offsets = [0, 0], sizes = [16, 8], strides = [1, 1]} : vector<16x128xf32> to vector<16x8xf32>
    %7 = vector.extract_strided_slice %5 {offsets = [0, 8], sizes = [16, 8], strides = [1, 1]} : vector<16x128xf32> to vector<16x8xf32>
    %8 = vector.extract_strided_slice %5 {offsets = [0, 16], sizes = [16, 8], strides = [1, 1]} : vector<16x128xf32> to vector<16x8xf32>
    %9 = vector.extract_strided_slice %5 {offsets = [0, 24], sizes = [16, 8], strides = [1, 1]} : vector<16x128xf32> to vector<16x8xf32>
    %10 = tpu.concatenate %6, %7, %8, %9 in 0 : vector<16x8xf32>, vector<16x8xf32>, vector<16x8xf32>, vector<16x8xf32> -> vector<64x8xf32>
    %11 = vector.extract_strided_slice %5 {offsets = [0, 32], sizes = [16, 8], strides = [1, 1]} : vector<16x128xf32> to vector<16x8xf32>
    %12 = vector.extract_strided_slice %5 {offsets = [0, 40], sizes = [16, 8], strides = [1, 1]} : vector<16x128xf32> to vector<16x8xf32>
    %13 = vector.extract_strided_slice %5 {offsets = [0, 48], sizes = [16, 8], strides = [1, 1]} : vector<16x128xf32> to vector<16x8xf32>
    %14 = vector.extract_strided_slice %5 {offsets = [0, 56], sizes = [16, 8], strides = [1, 1]} : vector<16x128xf32> to vector<16x8xf32>
    %15 = tpu.concatenate %11, %12, %13, %14 in 0 : vector<16x8xf32>, vector<16x8xf32>, vector<16x8xf32>, vector<16x8xf32> -> vector<64x8xf32>
    %16 = vector.extract_strided_slice %5 {offsets = [0, 64], sizes = [16, 8], strides = [1, 1]} : vector<16x128xf32> to vector<16x8xf32>
    %17 = vector.extract_strided_slice %5 {offsets = [0, 72], sizes = [16, 8], strides = [1, 1]} : vector<16x128xf32> to vector<16x8xf32>
    %18 = vector.extract_strided_slice %5 {offsets = [0, 80], sizes = [16, 8], strides = [1, 1]} : vector<16x128xf32> to vector<16x8xf32>
    %19 = vector.extract_strided_slice %5 {offsets = [0, 88], sizes = [16, 8], strides = [1, 1]} : vector<16x128xf32> to vector<16x8xf32>
    %20 = tpu.concatenate %16, %17, %18, %19 in 0 : vector<16x8xf32>, vector<16x8xf32>, vector<16x8xf32>, vector<16x8xf32> -> vector<64x8xf32>
    "tpu.trace_start"() <{level = 10 : i32, message = "nd,md->nm"}> : () -> ()
    %cst_4 = arith.constant dense<0.000000e+00> : vector<64x64xf32>
    %21 = tpu.matmul %10, %15, %cst_4 {dimension_numbers = #tpu.dot_dimension_numbers<[1], [1], [0], [0], [0, 0, 1, 0], [], []>} : vector<64x8xf32>, vector<64x8xf32>, vector<64x64xf32> -> vector<64x64xf32>
    "tpu.trace_stop"() : () -> ()
    %cst_5 = arith.constant 0.353553385 : f32
    %22 = vector.broadcast %cst_5 : f32 to vector<64x64xf32>
    %23 = arith.mulf %21, %22 : vector<64x64xf32>
    %24 = tpu.iota {dimensions = array<i32: 0>} : vector<64x64xi32>
    %25 = tpu.iota {dimensions = array<i32: 1>} : vector<64x64xi32>
    %c4_i32 = arith.constant 4 : i32
    %26 = vector.broadcast %c4_i32 : i32 to vector<64x64xi32>
    %27 = arith.shrsi %24, %26 : vector<64x64xi32>
    %c4_i32_6 = arith.constant 4 : i32
    %28 = vector.broadcast %c4_i32_6 : i32 to vector<64x64xi32>
    %29 = arith.shrsi %25, %28 : vector<64x64xi32>
    %30 = arith.cmpi eq, %27, %29 : vector<64x64xi32>
    %c1_i32 = arith.constant 1 : i32
    %31 = vector.broadcast %c1_i32 : i32 to vector<64x64xi32>
    %32 = arith.andi %24, %31 : vector<64x64xi32>
    %c1_i32_7 = arith.constant 1 : i32
    %33 = vector.broadcast %c1_i32_7 : i32 to vector<64x64xi32>
    %34 = arith.andi %25, %33 : vector<64x64xi32>
    %35 = arith.cmpi eq, %32, %34 : vector<64x64xi32>
    %36 = arith.andi %30, %35 : vector<64x64xi1>
    %cst_8 = arith.constant 0.000000e+00 : f32
    %cst_9 = arith.constant -1.000000e+30 : f32
    %37 = vector.broadcast %cst_8 : f32 to vector<64x64xf32>
    %38 = vector.broadcast %cst_9 : f32 to vector<64x64xf32>
    %39 = arith.select %36, %37, %38 : vector<64x64xi1>, vector<64x64xf32>
    %40 = arith.addf %23, %39 : vector<64x64xf32>
    %cst_10 = arith.constant dense<0xFF800000> : vector<64xf32>
    %41 = vector.multi_reduction <maximumf>, %40, %cst_10 [1] : vector<64x64xf32> to vector<64xf32>
    %42 = vector.shape_cast %41 : vector<64xf32> to vector<64x1xf32>
    %43 = vector.broadcast %42 : vector<64x1xf32> to vector<64x64xf32>
    %44 = arith.subf %40, %43 : vector<64x64xf32>
    %45 = math.exp %44 : vector<64x64xf32>
    %cst_11 = arith.constant dense<0.000000e+00> : vector<64xf32>
    %46 = vector.multi_reduction <add>, %45, %cst_11 [1] : vector<64x64xf32> to vector<64xf32>
    %47 = vector.shape_cast %46 : vector<64xf32> to vector<64x1xf32>
    %48 = tpu.reciprocal %47 : vector<64x1xf32> -> vector<64x1xf32>
    %49 = vector.broadcast %48 : vector<64x1xf32> to vector<64x64xf32>
    %50 = arith.mulf %45, %49 : vector<64x64xf32>
    %cst_12 = arith.constant dense<0.000000e+00> : vector<64x8xf32>
    %51 = tpu.matmul %50, %20, %cst_12 {dimension_numbers = #tpu.dot_dimension_numbers<[1], [0], [0], [1], [0, 0, 1, 1], [], []>} : vector<64x64xf32>, vector<64x8xf32>, vector<64x8xf32> -> vector<64x8xf32>
    %52 = vector.extract_strided_slice %51 {offsets = [0, 0], sizes = [16, 8], strides = [1, 1]} : vector<64x8xf32> to vector<16x8xf32>
    %53 = vector.extract_strided_slice %51 {offsets = [16, 0], sizes = [16, 8], strides = [1, 1]} : vector<64x8xf32> to vector<16x8xf32>
    %54 = vector.extract_strided_slice %51 {offsets = [32, 0], sizes = [16, 8], strides = [1, 1]} : vector<64x8xf32> to vector<16x8xf32>
    %55 = vector.extract_strided_slice %51 {offsets = [48, 0], sizes = [16, 8], strides = [1, 1]} : vector<64x8xf32> to vector<16x8xf32>
    %56 = tpu.concatenate %52, %53, %54, %55 in 1 : vector<16x8xf32>, vector<16x8xf32>, vector<16x8xf32>, vector<16x8xf32> -> vector<16x32xf32>
    %c32 = arith.constant 32 : index
    %c0_13 = arith.constant 0 : index
    %57 = vector.load %arg1[%c32, %c0_13] : memref<232x128xf32, #tpu.memory_space<vmem>>, vector<32x32xf32>
    %cst_14 = arith.constant dense<0.000000e+00> : vector<16x32xf32>
    %58 = tpu.matmul %56, %57, %cst_14 {dimension_numbers = #tpu.dot_dimension_numbers<[1], [0], [0], [1], [0, 0, 1, 1], [], []>} : vector<16x32xf32>, vector<32x32xf32>, vector<16x32xf32> -> vector<16x32xf32>
    %c225 = arith.constant 225 : index
    %c0_15 = arith.constant 0 : index
    %59 = vector.load %arg1[%c225, %c0_15] : memref<232x128xf32, #tpu.memory_space<vmem>>, vector<1x32xf32>
    %60 = vector.broadcast %59 : vector<1x32xf32> to vector<16x32xf32>
    %61 = arith.addf %58, %60 : vector<16x32xf32>
    %62 = arith.addf %0, %61 : vector<16x32xf32>
    %c226 = arith.constant 226 : index
    %c0_16 = arith.constant 0 : index
    %63 = vector.load %arg1[%c226, %c0_16] : memref<232x128xf32, #tpu.memory_space<vmem>>, vector<1x32xf32>
    %c227 = arith.constant 227 : index
    %c0_17 = arith.constant 0 : index
    %64 = vector.load %arg1[%c227, %c0_17] : memref<232x128xf32, #tpu.memory_space<vmem>>, vector<1x32xf32>
    %cst_18 = arith.constant dense<0.000000e+00> : vector<16xf32>
    %65 = vector.multi_reduction <add>, %62, %cst_18 [1] : vector<16x32xf32> to vector<16xf32>
    %66 = vector.shape_cast %65 : vector<16xf32> to vector<16x1xf32>
    %cst_19 = arith.constant 3.200000e+01 : f32
    %67 = vector.broadcast %cst_19 : f32 to vector<16x1xf32>
    %68 = arith.divf %66, %67 : vector<16x1xf32>
    %69 = vector.broadcast %68 : vector<16x1xf32> to vector<16x32xf32>
    %70 = arith.subf %62, %69 : vector<16x32xf32>
    %71 = arith.mulf %70, %70 : vector<16x32xf32>
    %cst_20 = arith.constant dense<0.000000e+00> : vector<16xf32>
    %72 = vector.multi_reduction <add>, %71, %cst_20 [1] : vector<16x32xf32> to vector<16xf32>
    %73 = vector.shape_cast %72 : vector<16xf32> to vector<16x1xf32>
    %cst_21 = arith.constant 3.200000e+01 : f32
    %74 = vector.broadcast %cst_21 : f32 to vector<16x1xf32>
    %75 = arith.divf %73, %74 : vector<16x1xf32>
    %76 = vector.broadcast %68 : vector<16x1xf32> to vector<16x32xf32>
    %77 = arith.subf %62, %76 : vector<16x32xf32>
    %cst_22 = arith.constant 9.99999974E-6 : f32
    %78 = vector.broadcast %cst_22 : f32 to vector<16x1xf32>
    %79 = arith.addf %75, %78 : vector<16x1xf32>
    %80 = math.rsqrt %79 : vector<16x1xf32>
    %81 = vector.broadcast %80 : vector<16x1xf32> to vector<16x32xf32>
    %82 = arith.mulf %77, %81 : vector<16x32xf32>
    %83 = vector.broadcast %63 : vector<1x32xf32> to vector<16x32xf32>
    %84 = arith.mulf %82, %83 : vector<16x32xf32>
    %85 = vector.broadcast %64 : vector<1x32xf32> to vector<16x32xf32>
    %86 = arith.addf %84, %85 : vector<16x32xf32>
    %c64 = arith.constant 64 : index
    %c0_23 = arith.constant 0 : index
    %87 = vector.load %arg1[%c64, %c0_23] : memref<232x128xf32, #tpu.memory_space<vmem>>, vector<32x128xf32>
    %cst_24 = arith.constant dense<0.000000e+00> : vector<16x128xf32>
    %88 = tpu.matmul %86, %87, %cst_24 {dimension_numbers = #tpu.dot_dimension_numbers<[1], [0], [0], [1], [0, 0, 1, 1], [], []>} : vector<16x32xf32>, vector<32x128xf32>, vector<16x128xf32> -> vector<16x128xf32>
    %c228 = arith.constant 228 : index
    %c0_25 = arith.constant 0 : index
    %89 = vector.load %arg1[%c228, %c0_25] : memref<232x128xf32, #tpu.memory_space<vmem>>, vector<1x128xf32>
    %90 = vector.broadcast %89 : vector<1x128xf32> to vector<16x128xf32>
    %91 = arith.addf %88, %90 : vector<16x128xf32>
    %cst_26 = arith.constant 0.000000e+00 : f32
    %92 = vector.broadcast %cst_26 : f32 to vector<16x128xf32>
    %93 = arith.maximumf %91, %92 : vector<16x128xf32>
    %c96 = arith.constant 96 : index
    %c0_27 = arith.constant 0 : index
    %94 = vector.load %arg1[%c96, %c0_27] : memref<232x128xf32, #tpu.memory_space<vmem>>, vector<128x32xf32>
    %cst_28 = arith.constant dense<0.000000e+00> : vector<16x32xf32>
    %95 = tpu.matmul %93, %94, %cst_28 {dimension_numbers = #tpu.dot_dimension_numbers<[1], [0], [0], [1], [0, 0, 1, 1], [], []>} : vector<16x128xf32>, vector<128x32xf32>, vector<16x32xf32> -> vector<16x32xf32>
    %c229 = arith.constant 229 : index
    %c0_29 = arith.constant 0 : index
    %96 = vector.load %arg1[%c229, %c0_29] : memref<232x128xf32, #tpu.memory_space<vmem>>, vector<1x32xf32>
    %97 = vector.broadcast %96 : vector<1x32xf32> to vector<16x32xf32>
    %98 = arith.addf %95, %97 : vector<16x32xf32>
    %99 = arith.addf %86, %98 : vector<16x32xf32>
    %c230 = arith.constant 230 : index
    %c0_30 = arith.constant 0 : index
    %100 = vector.load %arg1[%c230, %c0_30] : memref<232x128xf32, #tpu.memory_space<vmem>>, vector<1x32xf32>
    %c231 = arith.constant 231 : index
    %c0_31 = arith.constant 0 : index
    %101 = vector.load %arg1[%c231, %c0_31] : memref<232x128xf32, #tpu.memory_space<vmem>>, vector<1x32xf32>
    %cst_32 = arith.constant dense<0.000000e+00> : vector<16xf32>
    %102 = vector.multi_reduction <add>, %99, %cst_32 [1] : vector<16x32xf32> to vector<16xf32>
    %103 = vector.shape_cast %102 : vector<16xf32> to vector<16x1xf32>
    %cst_33 = arith.constant 3.200000e+01 : f32
    %104 = vector.broadcast %cst_33 : f32 to vector<16x1xf32>
    %105 = arith.divf %103, %104 : vector<16x1xf32>
    %106 = vector.broadcast %105 : vector<16x1xf32> to vector<16x32xf32>
    %107 = arith.subf %99, %106 : vector<16x32xf32>
    %108 = arith.mulf %107, %107 : vector<16x32xf32>
    %cst_34 = arith.constant dense<0.000000e+00> : vector<16xf32>
    %109 = vector.multi_reduction <add>, %108, %cst_34 [1] : vector<16x32xf32> to vector<16xf32>
    %110 = vector.shape_cast %109 : vector<16xf32> to vector<16x1xf32>
    %cst_35 = arith.constant 3.200000e+01 : f32
    %111 = vector.broadcast %cst_35 : f32 to vector<16x1xf32>
    %112 = arith.divf %110, %111 : vector<16x1xf32>
    %113 = vector.broadcast %105 : vector<16x1xf32> to vector<16x32xf32>
    %114 = arith.subf %99, %113 : vector<16x32xf32>
    %cst_36 = arith.constant 9.99999974E-6 : f32
    %115 = vector.broadcast %cst_36 : f32 to vector<16x1xf32>
    %116 = arith.addf %112, %115 : vector<16x1xf32>
    %117 = math.rsqrt %116 : vector<16x1xf32>
    %118 = vector.broadcast %117 : vector<16x1xf32> to vector<16x32xf32>
    %119 = arith.mulf %114, %118 : vector<16x32xf32>
    %120 = vector.broadcast %100 : vector<1x32xf32> to vector<16x32xf32>
    %121 = arith.mulf %119, %120 : vector<16x32xf32>
    %122 = vector.broadcast %101 : vector<1x32xf32> to vector<16x32xf32>
    %123 = arith.addf %121, %122 : vector<16x32xf32>
    %c0_37 = arith.constant 0 : index
    %c0_38 = arith.constant 0 : index
    %124 = vector.load %arg2[%c0_37, %c0_38] : memref<16x32xf32, #tpu.memory_space<vmem>>, vector<16x32xf32>
    tpu.vector_store %arg2[%c0_37, %c0_38], %123 {strides = array<i32>} : memref<16x32xf32, #tpu.memory_space<vmem>>, vector<16x32xf32>,
    return
  }
}

</mosaic_0001>

<bundles_post_ra>
// kernel: transformer_block.1
= control target key start
LH: loop header
LB: loop body
LE: loop exit
PB: predicated region body
PF: predicated region fallthrough
CT: control target
= control target key end

     0   :  { %7 = vsyncpa [#allocation3], 0  ;;  %s1863_s0 = inlined_call_operand.hbm [shape: f32[16,32], index: 0, kind: input, shape index: {}]   ;;  %s1864_s1 = inlined_call_operand.hbm [shape: f32[232,128], index: 1, kind: input, shape index: {}]   ;;  %s1865_s2 = inlined_call_operand.hbm [shape: f32[16,32], index: 2, kind: output, shape index: {}]  }
   0x1   :  { %8 = vsyncpa [#allocation6], 0 }
   0x2   :  { %9 = vsyncpa [#allocation4], 0  ;;  %s1526_s9 = smov [#allocation2]   ;;  %s1454_s13 = scalar_lea.hbm %s1863_s0, 256 }
   0x3   :  { %s15_s10 = sshll.u32 %s1526_s9, 4  ;;  %p1455_p0 = scmp.ne.s32.totalorder %s1863_s0, %s1454_s13  ;;  %s16_s10 = int_to_ptr.vmem [resolvable:$true] %s15_s10 }
   0x4   :  { %p1458_p1 = scmp.lt.u32.totalorder %s1454_s13, %s1863_s0 }
   0x6   :  { %p1460_p2 = pnand %p1458_p1, %p1455_p0 }
   0x8   :  { %1463 = shalt.err (!%p1460_p2)
}
   0x9   :  { %s1464_s18 = scalar_lea.vmem %s16_s10, 256  ;;  %p1469_p4 = scmp.lt.s32.totalorder %s16_s10, %s16_s10 }
   0xa   :  { %p1465_p3 = scmp.ne.s32.totalorder %s16_s10, %s1464_s18  ;;  %p1470_p5 = scmp.lt.s32.totalorder %s1464_s18, %s1464_s18 }
   0xc   :  { %p1471_p6 = por %p1470_p5, %p1469_p4 }
   0xe   :  { %p1472_p7 = pnand %p1471_p6, %p1465_p3 }
  0x10   :  { %1475 = shalt.err (!%p1472_p7)
}
  0x11   :  { %s1527_s19 = smov 128   ;;  %s1528_s20 = smov 8  }
  0x12   :  { %21 = dma.hbm_to_vmem [thread:$0]  %s1863_s0, 256, %s16_s10, [#allocation3], %s1527_s19, %s1527_s19, %s1528_s20  }
  0x13   :  { %s1529_s23 = smov [#allocation5]   ;;  %s1476_s27 = scalar_lea.hbm %s1864_s1, 3712 }
  0x14   :  { %s27_s24 = sshll.u32 %s1529_s23, 4  ;;  %p1477_p8 = scmp.ne.s32.totalorder %s1864_s1, %s1476_s27  ;;  %s28_s24 = int_to_ptr.vmem [resolvable:$true] %s27_s24 }
  0x15   :  { %p1480_p9 = scmp.lt.u32.totalorder %s1476_s27, %s1864_s1 }
  0x17   :  { %p1482_p10 = pnand %p1480_p9, %p1477_p8 }
  0x19   :  { %1485 = shalt.err (!%p1482_p10)
}
  0x1a   :  { %s1486_s4 = scalar_lea.vmem %s28_s24, 3712  ;;  %p1491_p12 = scmp.lt.s32.totalorder %s28_s24, %s28_s24 }
  0x1b   :  { %p1487_p11 = scmp.ne.s32.totalorder %s28_s24, %s1486_s4  ;;  %p1492_p13 = scmp.lt.s32.totalorder %s1486_s4, %s1486_s4 }
  0x1d   :  { %p1493_p0 = por %p1492_p13, %p1491_p12 }
  0x1f   :  { %p1494_p1 = pnand %p1493_p0, %p1487_p11 }
  0x21   :  { %1497 = shalt.err (!%p1494_p1)
}
  0x22   :  { %33 = dma.hbm_to_vmem [thread:$0]  %s1864_s1, 3712, %s28_s24, [#allocation6], %s1527_s19, %s1527_s19, %s1528_s20  }
  0x23   :  { %1520 = dma.done.wait [#allocation3], 256  }
  0x24   :  { %1521 = vsyncadd [#allocation3], 4294967040 }
  0x25   :  { %1522 = dma.done.wait [#allocation6], 3712  }
  0x26   :  { %1523 = vsyncadd [#allocation6], 4294963584  ;;  %vm51_vm0 = vcmask 261120   ;;  %v42_v0 = vld [vmem:[#allocation5] sm:$0xff]  ;;  %v43_v1 = vld [vmem:[#allocation5 + $0x8] sm:$0xff]  ;;  %vm163_vm1 = vcmask 64512   ;;  %v309_v40 = vlaneseq }
  0x27   :  { %v44_v2 = vld [vmem:[#allocation5 + $0x10] sm:$0xff]  ;;  %v1265_v3 = vpack.c.bf16 %v43_v1, %v42_v0  ;;  %v45_v4 = vld [vmem:[#allocation5 + $0x18] sm:$0xff]  ;;  %v1035_v8 = vld [vmem:[#allocation5 + $0xe0] ss:$0 sm:$0xff]  ;;  %s1530_s1 = smov 112   ;;  %s1531_s6 = smov 120  }
  0x28   :  { %v1584_v5 = vld [vmem:[#allocation2] sm:$0xff]  ;;  %v1269_v6 = vpack.c.bf16 %v45_v4, %v44_v2  ;;  %v1588_v7 = vld [vmem:[#allocation2 + $0x8] sm:$0xff]  ;;  %s1532_s7 = smov 104   ;;  %s1533_s8 = smov 96   ;;  %vm1607_vm2 = vmpackc.low %vm163_vm1, %vm163_vm1  ;;  %v310_v41 = vshrl.u32 %v309_v40, 7  ;;  %v319_v43 = vand.u32 127, %v309_v40 }
  0x29   :  { %1149 = vmatprep.mubr.msk.f32.mxu0 %vm51_vm0, %v1584_v5  ;;  %1266 = vmatprep.subr.bf16.mxu0 %v1265_v3  ;;  %v1534_v1 = vmov -1e+30   ;;  %vm378_vm14 = vcmask 523264   ;;  %s1535_s9 = smov 64   ;;  %s1536_s10 = smov 16  }
  0x2a   :  { %1268 = vmatpush3.bf16.msra.mxu0 %v1265_v3  ;;  %v311_v42 = vadd.s32 8, %v310_v41  ;;  %v1634_v45 = vshra.s32 %v319_v43, 4  ;;  %v1636_v47 = vand.u32 1, %v319_v43  ;;  %v312_v48 = vadd.s32 16, %v310_v41  ;;  %s1537_s11 = smov 24   ;;  %s1538_s12 = smov [#allocation7]  }
  0x2b   :  { %1270 = vmatprep.subr.bf16.mxu0 %v1269_v6  ;;  %v320_v49 = vshra.s32 %v310_v41, 4  ;;  %v337_v50 = vand.u32 1, %v310_v41  ;;  %v313_v51 = vadd.s32 24, %v310_v41  ;;  %v314_v56 = vadd.s32 32, %v310_v41  ;;  %s1022_s13 = sshll.u32 %s1538_s12, 4  ;;  %s1023_s13 = int_to_ptr.vmem [resolvable:$true] %s1022_s13 }
  0x2c   :  { %v321_v44 = vshra.s32 %v311_v42, 4  ;;  %v338_v46 = vand.u32 1, %v311_v42  ;;  %v322_v54 = vshra.s32 %v312_v48, 4  ;;  %v339_v55 = vand.u32 1, %v312_v48  ;;  %s1498_s14 = scalar_lea.vmem %s1023_s13, 256  ;;  %p1503_p3 = scmp.lt.s32.totalorder %s1023_s13, %s1023_s13 }
  0x2d   :  { %vm1649_vm5 = vcmp.eq.s32.totalorder %v320_v49, %v1634_v45  ;;  %vm1654_vm6 = vcmp.eq.s32.totalorder %v337_v50, %v1636_v47  ;;  %v323_v59 = vshra.s32 %v313_v51, 4  ;;  %v340_v60 = vand.u32 1, %v313_v51  ;;  %p1499_p2 = scmp.ne.s32.totalorder %s1023_s13, %s1498_s14  ;;  %p1504_p4 = scmp.lt.s32.totalorder %s1498_s14, %s1498_s14 }
  0x2e   :  { %1272 = vmatpush3.bf16.msra.mxu0 %v1269_v6  ;;  %vm1639_vm3 = vcmp.eq.s32.totalorder %v321_v44, %v1634_v45  ;;  %vm1644_vm4 = vcmp.eq.s32.totalorder %v338_v46, %v1636_v47  ;;  %v315_v61 = vadd.s32 40, %v310_v41  ;;  %vm354_vm8 = vmand %vm1649_vm5, %vm1654_vm6  ;;  %vm1667_vm9 = vcmp.eq.s32.totalorder %v322_v54, %v1634_v45 }
  0x2f   :  { %vm355_vm7 = vmand %vm1639_vm3, %vm1644_vm4  ;;  %vm1672_vm10 = vcmp.eq.s32.totalorder %v339_v55, %v1636_v47  ;;  %v324_v0 = vshra.s32 %v314_v56, 4  ;;  %v341_v3 = vand.u32 1, %v314_v56  ;;  %v316_v4 = vadd.s32 48, %v310_v41  ;;  %p1505_p5 = por %p1504_p4, %p1503_p3 }
  0x30   :  { %v363_v2 = vsel %vm355_vm7, 0.0, %v1534_v1  ;;  %vm1678_vm11 = vcmp.eq.s32.totalorder %v323_v59, %v1634_v45  ;;  %vm1683_vm12 = vcmp.eq.s32.totalorder %v340_v60, %v1636_v47  ;;  %vm356_vm13 = vmand %vm1667_vm9, %vm1672_vm10 }
  0x31   :  { %1150 = vmatmul.mubr.msk.f32.vlgmr.msra.gmra.mrb[0].mxu0 %vm51_vm0, %v1588_v7  ;;  %vm1693_vm15 = vcmp.eq.s32.totalorder %v324_v0, %v1634_v45  ;;  %vm1704_vm3 = vcmp.eq.s32.totalorder %v341_v3, %v1636_v47  ;;  %p1506_p6 = pnand %p1505_p5, %p1499_p2 }
  0x32   :  { %vm358_vm6 = vmand %vm1693_vm15, %vm1704_vm3  ;;  %vm649_vm15 = vcmask 195584  }
  0x33   :  { %v366_v46 = vsel %vm358_vm6, 0.0, %v1534_v1 }
 0x104   :  { %v1151_v9 = vpop.f32.mrb[0].mxu0 }
 0x105   :  { %v124_v10 = vpop.f32.mrb[1].mxu0  ;;  %v130_v12 = vadd.f32 %v1151_v9, %v1035_v8 }
 0x106   :  { %v125_v11 = vadd.f32 %v1035_v8, %v124_v10  ;;  %v325_v10 = vshra.s32 %v315_v61, 4 }
 0x108   :  { %139 = vrot.lane.b32.xlu1 %v125_v11, %s1530_s1  ;;  %135 = vrot.lane.b32.xlu0 %v125_v11, %s1531_s6  ;;  %v1593_v13 = vpack.i.bf16 %v130_v12, %v125_v11  ;;  %vm1710_vm4 = vcmp.eq.s32.totalorder %v325_v10, %v1634_v45 }
 0x109   :  { %1168 = vmatprep.mubr.msk.f32.mxu1 %vm163_vm1, %v125_v11 }
 0x10c   :  { %141 = vrot.lane.b32.xlu1 %v130_v12, %s1530_s1  ;;  %137 = vrot.lane.b32.xlu0 %v130_v12, %s1531_s6 }
 0x110   :  { %145 = vrot.lane.b32.xlu1 %v130_v12, %s1532_s7  ;;  %143 = vrot.lane.b32.xlu0 %v125_v11, %s1532_s7  ;;  %v342_v11 = vand.u32 1, %v315_v61 }
 0x112   :  { %vm1715_vm5 = vcmp.eq.s32.totalorder %v342_v11, %v1636_v47 }
 0x113   :  { %vm359_vm9 = vmand %vm1710_vm4, %vm1715_vm5 }
 0x114   :  { %1375 = vrot.lane.b32.xlu0 %v1593_v13, %s1533_s8 }
 0x17a   :  { %v140_v14 = vpop.permute.xlu1 %139  ;;  %v136_v15 = vpop.permute.xlu0 %135 }
 0x17e   :  { %v142_v16 = vpop.permute.xlu1 %141  ;;  %v138_v17 = vpop.permute.xlu0 %137 }
 0x17f   :  { %v1596_v18 = vpack.i.bf16 %v142_v16, %v140_v14  ;;  %v1598_v19 = vpack.i.bf16 %v138_v17, %v136_v15 }
 0x181   :  { %1385 = vrot.lane.b32.xlu0 %v1596_v18, %s1533_s8  ;;  %1380 = vrot.lane.b32.xlu1 %v1598_v19, %s1533_s8 }
 0x182   :  { %v146_v20 = vpop.permute.xlu1 %145  ;;  %v144_v21 = vpop.permute.xlu0 %143 }
 0x183   :  { %v1602_v22 = vpack.i.bf16 %v146_v20, %v144_v21 }
 0x185   :  { %1390 = vrot.lane.b32.xlu1 %v1602_v22, %s1533_s8 }
 0x186   :  { %v1376_v23 = vpop.permute.xlu0 %1375 }
 0x187   :  { %v1378_v24 = vunpack.i.h.bf16 %v1376_v23  ;;  %v1377_v25 = vunpack.i.l.bf16 %v1376_v23 }
 0x189   :  { %v1273_v27 = vpack.c.bf16 %v1378_v24, %v1377_v25  ;;  %v326_v24 = vshra.s32 %v316_v4, 4  ;;  %v343_v25 = vand.u32 1, %v316_v4 }
 0x18b   :  { %1275 = vmatprep.subr.msk.bf16.mxu1 %vm1607_vm2, %v1273_v27  ;;  %vm1733_vm7 = vcmp.eq.s32.totalorder %v326_v24, %v1634_v45 }
 0x18c   :  { %1278 = vmatpush3.bf16.xpose.msk.msra.mxu1 %vm1607_vm2, %v1273_v27 }
 0x1f3   :  { %v1381_v28 = vpop.permute.xlu1 %1380  ;;  %v1386_v29 = vpop.permute.xlu0 %1385 }
 0x1f4   :  { %v1383_v30 = vunpack.i.h.bf16 %v1381_v28  ;;  %v1382_v31 = vunpack.i.l.bf16 %v1381_v28  ;;  %v1388_v32 = vunpack.i.h.bf16 %v1386_v29  ;;  %v1387_v33 = vunpack.i.l.bf16 %v1386_v29 }
 0x1f5   :  { %v364_v28 = vsel %vm356_vm13, 0.0, %v1534_v1 }
 0x1f6   :  { %v1279_v34 = vpack.c.bf16 %v1383_v30, %v1382_v31  ;;  %v1285_v35 = vpack.c.bf16 %v1388_v32, %v1387_v33 }
 0x1f7   :  { %v1391_v36 = vpop.permute.xlu1 %1390 }
 0x1f8   :  { %1281 = vmatprep.subr.msk.bf16.mxu1 %vm1607_vm2, %v1279_v34  ;;  %v1393_v37 = vunpack.i.h.bf16 %v1391_v36  ;;  %v1392_v38 = vunpack.i.l.bf16 %v1391_v36 }
 0x1f9   :  { %1284 = vmatpush3.bf16.xpose.msk.msra.mxu1 %vm1607_vm2, %v1279_v34 }
 0x1fa   :  { %1287 = vmatprep.subr.msk.bf16.mxu1 %vm1607_vm2, %v1285_v35  ;;  %v1291_v39 = vpack.c.bf16 %v1393_v37, %v1392_v38 }
 0x201   :  { %1290 = vmatpush3.bf16.xpose.msk.msra.mxu1 %vm1607_vm2, %v1285_v35 }
 0x202   :  { %1293 = vmatprep.subr.msk.bf16.mxu1 %vm1607_vm2, %v1291_v39 }
 0x209   :  { %1296 = vmatpush3.bf16.xpose.msk.msra.mxu1 %vm1607_vm2, %v1291_v39  ;;  %vm357_vm2 = vmand %vm1678_vm11, %vm1683_vm12 }
 0x20a   :  { %v365_v38 = vsel %vm357_vm2, 0.0, %v1534_v1 }
 0x210   :  { %1169 = vmatmul.mubr.msk.f32.vlgmr.msra.gmra.mrb[0].mxu1 %vm163_vm1, %v130_v12 }
 0x211   :  { %1171 = vmatprep.mubr.msk.f32.mxu1 %vm163_vm1, %v136_v15  ;;  %v362_v15 = vsel %vm354_vm8, 0.0, %v1534_v1  ;;  %vm1738_vm8 = vcmp.eq.s32.totalorder %v343_v25, %v1636_v47 }
 0x212   :  { %vm360_vm12 = vmand %vm1733_vm7, %vm1738_vm8 }
 0x213   :  { %v368_v56 = vsel %vm360_vm12, 0.0, %v1534_v1 }
 0x214   :  { %1172 = vmatmul.mubr.msk.f32.gmra.mrb[2].mxu1 %vm163_vm1, %v138_v17 }
 0x215   :  { %1174 = vmatprep.mubr.msk.f32.mxu1 %vm163_vm1, %v140_v14 }
 0x218   :  { %1175 = vmatmul.mubr.msk.f32.gmra.mrb[4].mxu1 %vm163_vm1, %v142_v16  ;;  %v317_v16 = vadd.s32 56, %v310_v41 }
 0x219   :  { %1177 = vmatprep.mubr.msk.f32.mxu1 %vm163_vm1, %v144_v21 }
 0x21a   :  { %v327_v34 = vshra.s32 %v317_v16, 4  ;;  %v344_v35 = vand.u32 1, %v317_v16 }
 0x21c   :  { %1178 = vmatmul.mubr.msk.f32.gmra.mrb[6].mxu1 %vm163_vm1, %v146_v20  ;;  %vm1748_vm10 = vcmp.eq.s32.totalorder %v327_v34, %v1634_v45  ;;  %vm1753_vm11 = vcmp.eq.s32.totalorder %v344_v35, %v1636_v47  ;;  %v367_v45 = vsel %vm359_vm9, 0.0, %v1534_v1 }
 0x21d   :  { %vm361_vm13 = vmand %vm1748_vm10, %vm1753_vm11 }
 0x21e   :  { %v369_v61 = vsel %vm361_vm13, 0.0, %v1534_v1 }
 0x2e3   :  { %v1170_v6 = vpop.f32.mrb[0].mxu1 }
 0x2e4   :  { %v302_v12 = vmul.f32 0.35355338, %v1170_v6  ;;  %v262_v14 = vpop.f32.mrb[1].mxu1 }
 0x2e5   :  { %v301_v17 = vmul.f32 0.35355338, %v262_v14 }
 0x2e6   :  { %v1697_v21 = vadd.f32 %v363_v2, %v302_v12 }
 0x2e7   :  { %v1173_v26 = vpop.f32.mrb[2].mxu1  ;;  %v370_v27 = vadd.f32 %v362_v15, %v301_v17 }
 0x2e8   :  { %v304_v31 = vmul.f32 0.35355338, %v1173_v26  ;;  %v272_v32 = vpop.f32.mrb[3].mxu1  ;;  %v382_v33 = vsel %vm378_vm14, %v1697_v21, -inf }
 0x2e9   :  { %v303_v36 = vmul.f32 0.35355338, %v272_v32  ;;  %383 = vmax.xlane.f32.xlu1 %v382_v33  ;;  %v379_v37 = vsel %vm378_vm14, %v370_v27, -inf }
 0x2ea   :  { %380 = vmax.xlane.f32.xlu0 %v379_v37  ;;  %v373_v44 = vadd.f32 %v365_v38, %v304_v31 }
 0x2eb   :  { %v1176_v41 = vpop.f32.mrb[4].mxu1  ;;  %v372_v42 = vadd.f32 %v364_v28, %v303_v36 }
 0x2ec   :  { %v282_v43 = vpop.f32.mrb[5].mxu1  ;;  %v306_v50 = vmul.f32 0.35355338, %v1176_v41  ;;  %v388_v55 = vsel %vm378_vm14, %v373_v44, -inf }
 0x2ed   :  { %v305_v51 = vmul.f32 0.35355338, %v282_v43  ;;  %v385_v52 = vsel %vm378_vm14, %v372_v42, -inf }
 0x2ee   :  { %386 = vmax.xlane.f32.xlu0 %v385_v52  ;;  %v375_v60 = vadd.f32 %v367_v45, %v306_v50 }
 0x2ef   :  { %v1179_v53 = vpop.f32.mrb[6].mxu1  ;;  %v374_v54 = vadd.f32 %v366_v46, %v305_v51 }
 0x2f0   :  { %v292_v47 = vpop.f32.mrb[7].mxu1  ;;  %v308_v57 = vmul.f32 0.35355338, %v1179_v53  ;;  %v394_v63 = vsel %vm378_vm14, %v375_v60, -inf }
 0x2f1   :  { %v307_v58 = vmul.f32 0.35355338, %v292_v47  ;;  %v391_v59 = vsel %vm378_vm14, %v374_v54, -inf }
 0x2f2   :  { %389 = vmax.xlane.f32.xlu0 %v388_v55  ;;  %392 = vmax.xlane.f32.xlu1 %v391_v59  ;;  %v377_v2 = vadd.f32 %v369_v61, %v308_v57 }
 0x2f3   :  { %v376_v62 = vadd.f32 %v368_v56, %v307_v58 }
 0x2f4   :  { %v400_v3 = vsel %vm378_vm14, %v377_v2, -inf }
 0x2f5   :  { %v397_v0 = vsel %vm378_vm14, %v376_v62, -inf }
 0x2f6   :  { %395 = vmax.xlane.f32.xlu0 %v394_v63  ;;  %398 = vmax.xlane.f32.xlu1 %v397_v0 }
 0x2fa   :  { %401 = vmax.xlane.f32.xlu0 %v400_v3 }
 0x307   :  { %1395 = vrot.lane.b32.xlu1 %v1593_v13, %s1535_s9 }
 0x376   :  { %v384_v4 = vpop.xlane.xlu1 %383 }
 0x377   :  { %v404_v6 = vsub.f32 %v1697_v21, %v384_v4  ;;  %v381_v8 = vpop.xlane.xlu0 %380 }
 0x378   :  { %v403_v1 = vsub.f32 %v370_v27, %v381_v8 }
 0x379   :  { %v413_v9 = vmul.f32 1.442695, %v404_v6 }
 0x37a   :  { %v411_v10 = vmul.f32 1.442695, %v403_v1 }
 0x37b   :  { %1414 = vpow2.f32 %v413_v9  ;;  %v387_v11 = vpop.xlane.xlu0 %386 }
 0x37c   :  { %1416 = vpow2.f32 %v411_v10  ;;  %v405_v12 = vsub.f32 %v372_v42, %v387_v11 }
 0x37e   :  { %v415_v14 = vmul.f32 1.442695, %v405_v12 }
 0x37f   :  { %v390_v15 = vpop.xlane.xlu0 %389  ;;  %v393_v16 = vpop.xlane.xlu1 %392 }
 0x380   :  { %1418 = vpow2.f32 %v415_v14  ;;  %v406_v17 = vsub.f32 %v373_v44, %v390_v15  ;;  %v407_v20 = vsub.f32 %v374_v54, %v393_v16 }
 0x382   :  { %v417_v23 = vmul.f32 1.442695, %v406_v17  ;;  %v419_v24 = vmul.f32 1.442695, %v407_v20 }
 0x383   :  { %v396_v13 = vpop.xlane.xlu0 %395  ;;  %v399_v25 = vpop.xlane.xlu1 %398 }
 0x384   :  { %1420 = vpow2.f32 %v417_v23  ;;  %v408_v21 = vsub.f32 %v375_v60, %v396_v13  ;;  %v409_v29 = vsub.f32 %v376_v62, %v399_v25 }
 0x385   :  { %v1777_v26 = vpop.eup %1414  ;;  %1422 = vpow2.f32 %v419_v24 }
 0x386   :  { %v1417_v27 = vpop.eup %1416  ;;  %v421_v28 = vmul.f32 1.442695, %v408_v21  ;;  %v430_v30 = vsel %vm378_vm14, %v1777_v26, 0.0  ;;  %v423_v38 = vmul.f32 1.442695, %v409_v29  ;;  %v654_v29 = vld [vmem:[#allocation5 + $0x30] sm:$0xff] }
 0x387   :  { %431 = vadd.xlane.f32.xlu0 %v430_v30  ;;  %v402_v31 = vpop.xlane.xlu0 %401  ;;  %v1396_v32 = vpop.permute.xlu1 %1395  ;;  %v427_v33 = vsel %vm378_vm14, %v1417_v27, 0.0  ;;  %v655_v30 = vld [vmem:[#allocation5 + $0x38] sm:$0xff] }
 0x388   :  { %1424 = vpow2.f32 %v421_v28  ;;  %v410_v34 = vsub.f32 %v377_v2, %v402_v31  ;;  %v1398_v35 = vunpack.i.h.bf16 %v1396_v32  ;;  %v1397_v36 = vunpack.i.l.bf16 %v1396_v32  ;;  %428 = vadd.xlane.f32.xlu1 %v427_v33 }
 0x389   :  { %v1317_v31 = vpack.c.bf16 %v655_v30, %v654_v29  ;;  %v888_v29 = vld [vmem:[#allocation5 + $0xb8] sm:$0xff] }
 0x38a   :  { %v1782_v37 = vpop.eup %1418  ;;  %v425_v39 = vmul.f32 1.442695, %v410_v34  ;;  %v1297_v40 = vpack.c.bf16 %v1398_v35, %v1397_v36 }
 0x38b   :  { %v433_v41 = vsel %vm378_vm14, %v1782_v37, 0.0 }
 0x38c   :  { %1426 = vpow2.f32 %v425_v39  ;;  %434 = vadd.xlane.f32.xlu1 %v433_v41  ;;  %1298 = vmatprep.subr.bf16.mxu0 %v1297_v40 }
 0x38d   :  { %1300 = vmatpush3.bf16.msra.mxu0 %v1297_v40  ;;  %1428 = vpow2.f32 %v423_v38 }
 0x38e   :  { %v1786_v42 = vpop.eup %1420 }
 0x38f   :  { %v1788_v43 = vpop.eup %1422  ;;  %v436_v44 = vsel %vm378_vm14, %v1786_v42, 0.0 }
 0x390   :  { %437 = vadd.xlane.f32.xlu0 %v436_v44  ;;  %v439_v46 = vsel %vm378_vm14, %v1788_v43, 0.0 }
 0x391   :  { %440 = vadd.xlane.f32.xlu1 %v439_v46 }
 0x392   :  { %v1794_v48 = vpop.eup %1424 }
 0x393   :  { %v442_v49 = vsel %vm378_vm14, %v1794_v48, 0.0 }
 0x394   :  { %443 = vadd.xlane.f32.xlu0 %v442_v49 }
 0x396   :  { %v1798_v50 = vpop.eup %1426 }
 0x397   :  { %v448_v51 = vsel %vm378_vm14, %v1798_v50, 0.0  ;;  %v1429_v52 = vpop.eup %1428 }
 0x398   :  { %449 = vadd.xlane.f32.xlu0 %v448_v51  ;;  %v445_v45 = vsel %vm378_vm14, %v1429_v52, 0.0 }
 0x39c   :  { %446 = vadd.xlane.f32.xlu0 %v445_v45 }
 0x3a2   :  { %1405 = vrot.lane.b32.xlu1 %v1596_v18, %s1535_s9 }
 0x3a6   :  { %1410 = vrot.lane.b32.xlu1 %v1602_v22, %s1535_s9 }
 0x3b2   :  { %1400 = vrot.lane.b32.xlu0 %v1598_v19, %s1535_s9 }
 0x414   :  { %v432_v54 = vpop.xlane.xlu0 %431 }
 0x415   :  { %v429_v53 = vpop.xlane.xlu1 %428 }
 0x416   :  { %1430 = vrcp.f32 %v429_v53  ;;  %v1062_v53 = vld [vmem:[#allocation5 + $0xe1] ss:$0 sm:$0xff] }
 0x417   :  { %1432 = vrcp.f32 %v432_v54 }
 0x419   :  { %v435_v47 = vpop.xlane.xlu1 %434 }
 0x41a   :  { %1434 = vrcp.f32 %v435_v47 }
 0x41d   :  { %v438_v55 = vpop.xlane.xlu0 %437 }
 0x41e   :  { %v441_v59 = vpop.xlane.xlu1 %440  ;;  %1436 = vrcp.f32 %v438_v55 }
 0x41f   :  { %1438 = vrcp.f32 %v441_v59 }
 0x420   :  { %v1431_v56 = vpop.eup %1430 }
 0x421   :  { %v444_v57 = vpop.xlane.xlu0 %443  ;;  %v459_v58 = vmul.f32 %v1431_v56, %v1417_v27  ;;  %v1433_v9 = vpop.eup %1432  ;;  %v653_v27 = vld [vmem:[#allocation5 + $0x28] sm:$0xff] }
 0x422   :  { %v1406_v61 = vpop.permute.xlu1 %1405  ;;  %1440 = vrcp.f32 %v444_v57  ;;  %v460_v11 = vmul.f32 %v1433_v9, %v1777_v26  ;;  %v652_v26 = vld [vmem:[#allocation5 + $0x20] sm:$0xff] }
 0x423   :  { %1196 = vmatprep.mubr.msk.f32.mxu0 %vm378_vm14, %v459_v58  ;;  %v1408_v63 = vunpack.i.h.bf16 %v1406_v61  ;;  %v1407_v22 = vunpack.i.l.bf16 %v1406_v61  ;;  %v1313_v28 = vpack.c.bf16 %v653_v27, %v652_v26  ;;  %v886_v26 = vld [vmem:[#allocation5 + $0xa8] sm:$0xff] }
 0x424   :  { %v1435_v10 = vpop.eup %1434 }
 0x425   :  { %v450_v60 = vpop.xlane.xlu0 %449  ;;  %v1305_v4 = vpack.c.bf16 %v1408_v63, %v1407_v22  ;;  %v461_v14 = vmul.f32 %v1435_v10, %v1782_v37  ;;  %v877_v10 = vld [vmem:[#allocation5 + $0x60] sm:$0xff] }
 0x426   :  { %v1411_v19 = vpop.permute.xlu1 %1410 }
 0x427   :  { %v1413_v6 = vunpack.i.h.bf16 %v1411_v19  ;;  %v1412_v8 = vunpack.i.l.bf16 %v1411_v19 }
 0x428   :  { %v1437_v12 = vpop.eup %1436 }
 0x429   :  { %v447_v18 = vpop.xlane.xlu0 %446  ;;  %v1309_v1 = vpack.c.bf16 %v1413_v6, %v1412_v8  ;;  %v1439_v15 = vpop.eup %1438  ;;  %v462_v16 = vmul.f32 %v1437_v12, %v1786_v42  ;;  %v787_v8 = vld [vmem:[#allocation5 + $0x50] sm:$0xff] }
 0x42a   :  { %1442 = vrcp.f32 %v447_v18  ;;  %v463_v20 = vmul.f32 %v1439_v15, %v1788_v43  ;;  %v879_v12 = vld [vmem:[#allocation5 + $0x70] sm:$0xff]  ;;  %v880_v15 = vld [vmem:[#allocation5 + $0x78] sm:$0xff] }
 0x42b   :  { %1444 = vrcp.f32 %v450_v60 }
 0x42c   :  { %v1441_v17 = vpop.eup %1440 }
 0x42d   :  { %v1401_v62 = vpop.permute.xlu0 %1400  ;;  %v464_v24 = vmul.f32 %v1441_v17, %v1794_v48  ;;  %v881_v17 = vld [vmem:[#allocation5 + $0x80] sm:$0xff] }
 0x42e   :  { %v1403_v0 = vunpack.i.h.bf16 %v1401_v62  ;;  %v1402_v2 = vunpack.i.l.bf16 %v1401_v62 }
 0x430   :  { %v1301_v3 = vpack.c.bf16 %v1403_v0, %v1402_v2 }
 0x432   :  { %1302 = vmatprep.subr.bf16.mxu0 %v1301_v3 }
 0x433   :  { %1304 = vmatpush3.bf16.msra.mxu0 %v1301_v3  ;;  %v785_v3 = vld [vmem:[#allocation5 + $0x40] sm:$0xff] }
 0x434   :  { %1306 = vmatprep.subr.bf16.mxu0 %v1305_v4  ;;  %v1443_v23 = vpop.eup %1442 }
 0x435   :  { %v1445_v13 = vpop.eup %1444  ;;  %v465_v25 = vmul.f32 %v1443_v23, %v1429_v52 }
 0x436   :  { %v466_v21 = vmul.f32 %v1445_v13, %v1798_v50  ;;  %v884_v13 = vld [vmem:[#allocation5 + $0x98] sm:$0xff] }
 0x437   :  { %1308 = vmatpush3.bf16.msra.mxu0 %v1305_v4  ;;  %v786_v4 = vld [vmem:[#allocation5 + $0x48] sm:$0xff] }
 0x438   :  { %1310 = vmatprep.subr.bf16.mxu0 %v1309_v1  ;;  %v1321_v6 = vpack.c.bf16 %v786_v4, %v785_v3 }
 0x43b   :  { %1312 = vmatpush3.bf16.msra.mxu0 %v1309_v1  ;;  %v788_v1 = vld [vmem:[#allocation5 + $0x58] sm:$0xff] }
 0x43c   :  { %1314 = vmatprep.subr.bf16.mxu0 %v1313_v28  ;;  %v1325_v9 = vpack.c.bf16 %v788_v1, %v787_v8 }
 0x43e   :  { %1197 = vmatmul.mubr.msk.f32.vlgmr.msra.gmra.mrb[2].mxu0 %vm378_vm14, %v460_v11  ;;  %v878_v11 = vld [vmem:[#allocation5 + $0x68] sm:$0xff] }
 0x43f   :  { %1199 = vmatprep.mubr.msk.f32.mxu0 %vm378_vm14, %v461_v14  ;;  %1316 = vmatpush3.bf16.msra.mxu0 %v1313_v28  ;;  %v1329_v14 = vpack.c.bf16 %v878_v11, %v877_v10  ;;  %v887_v28 = vld [vmem:[#allocation5 + $0xb0] sm:$0xff] }
 0x440   :  { %1318 = vmatprep.subr.bf16.mxu0 %v1317_v31  ;;  %v1349_v30 = vpack.c.bf16 %v888_v29, %v887_v28 }
 0x441   :  { %1330 = vmatprep.subr.bf16.mxu1 %v1329_v14 }
 0x442   :  { %1200 = vmatmul.mubr.msk.f32.gmra.mrb[4].mxu0 %vm378_vm14, %v462_v16  ;;  %v1333_v16 = vpack.c.bf16 %v880_v15, %v879_v12  ;;  %1332 = vmatpush3.bf16.msra.mxu1 %v1329_v14 }
 0x443   :  { %1202 = vmatprep.mubr.msk.f32.mxu0 %vm378_vm14, %v463_v20  ;;  %1320 = vmatpush3.bf16.msra.mxu0 %v1317_v31  ;;  %v882_v20 = vld [vmem:[#allocation5 + $0x88] sm:$0xff]  ;;  %v889_v31 = vld [vmem:[#allocation5 + $0xc0] sm:$0xff] }
 0x444   :  { %1322 = vmatprep.subr.bf16.mxu0 %v1321_v6  ;;  %1334 = vmatprep.subr.bf16.mxu1 %v1333_v16  ;;  %v1337_v23 = vpack.c.bf16 %v882_v20, %v881_v17 }
 0x446   :  { %1203 = vmatmul.mubr.msk.f32.gmra.mrb[6].mxu0 %vm378_vm14, %v464_v24  ;;  %v883_v24 = vld [vmem:[#allocation5 + $0x90] sm:$0xff]  ;;  %1336 = vmatpush3.bf16.msra.mxu1 %v1333_v16 }
 0x447   :  { %1205 = vmatprep.mubr.msk.f32.mxu0 %vm378_vm14, %v465_v25  ;;  %1338 = vmatprep.subr.bf16.mxu1 %v1337_v23  ;;  %v1341_v25 = vpack.c.bf16 %v884_v13, %v883_v24  ;;  %v1071_v24 = vld [vmem:[#allocation5 + $0xe6] ss:$0 sm:$0xff] }
 0x44a   :  { %1206 = vmatmul.mubr.msk.f32.gmra.mrb[8].mxu0 %vm378_vm14, %v466_v21  ;;  %vm646_vm14 = vcmask 130048   ;;  %v885_v21 = vld [vmem:[#allocation5 + $0xa0] sm:$0xff]  ;;  %1340 = vmatpush3.bf16.msra.mxu1 %v1337_v23 }
 0x44b   :  { %1342 = vmatprep.subr.bf16.mxu1 %v1341_v25  ;;  %v1345_v27 = vpack.c.bf16 %v886_v26, %v885_v21  ;;  %v1072_v26 = vld [vmem:[#allocation5 + $0xe7] ss:$0 sm:$0xff] }
 0x44e   :  { %1344 = vmatpush3.bf16.msra.mxu1 %v1341_v25 }
 0x44f   :  { %1346 = vmatprep.subr.bf16.mxu1 %v1345_v27 }
 0x452   :  { %1348 = vmatpush3.bf16.msra.mxu1 %v1345_v27 }
 0x453   :  { %1350 = vmatprep.subr.bf16.mxu1 %v1349_v30 }
 0x456   :  { %1352 = vmatpush3.bf16.msra.mxu1 %v1349_v30 }
 0x511   :  { %v1198_v32 = vpop.f32.mrb[2].mxu0 }
 0x512   :  { %v581_v33 = vpop.f32.mrb[3].mxu0 }
 0x515   :  { %v1201_v34 = vpop.f32.mrb[4].mxu0 }
 0x516   :  { %624 = vrot.lane.b32.xlu1 %v1201_v34, %s1528_s20  ;;  %v591_v35 = vpop.f32.mrb[5].mxu0 }
 0x519   :  { %v1204_v36 = vpop.f32.mrb[6].mxu0 }
 0x51a   :  { %622 = vrot.lane.b32.xlu1 %v591_v35, %s1528_s20  ;;  %v601_v37 = vpop.f32.mrb[7].mxu0 }
 0x51b   :  { %630 = vrot.lane.b32.xlu0 %v601_v37, %s1536_s10 }
 0x51d   :  { %v1207_v38 = vpop.f32.mrb[8].mxu0 }
 0x51e   :  { %632 = vrot.lane.b32.xlu1 %v1204_v36, %s1536_s10  ;;  %v611_v39 = vpop.f32.mrb[9].mxu0 }
 0x51f   :  { %638 = vrot.lane.b32.xlu0 %v611_v39, %s1537_s11 }
 0x522   :  { %640 = vrot.lane.b32.xlu1 %v1207_v38, %s1537_s11 }
 0x588   :  { %v625_v40 = vpop.permute.xlu1 %624 }
 0x589   :  { %v645_v50 = vsel %vm163_vm1, %v1198_v32, %v625_v40  ;;  %v890_v32 = vld [vmem:[#allocation5 + $0xc8] sm:$0xff] }
 0x58c   :  { %v623_v41 = vpop.permute.xlu1 %622 }
 0x58d   :  { %v631_v42 = vpop.permute.xlu0 %630  ;;  %v644_v43 = vsel %vm163_vm1, %v581_v33, %v623_v41  ;;  %v1353_v33 = vpack.c.bf16 %v890_v32, %v889_v31  ;;  %v1065_v41 = vld [vmem:[#allocation5 + $0xe2] ss:$0 sm:$0xff] }
 0x58e   :  { %v647_v46 = vsel %vm646_vm14, %v644_v43, %v631_v42  ;;  %v1066_v43 = vld [vmem:[#allocation5 + $0xe3] ss:$0 sm:$0xff] }
 0x58f   :  { %1354 = vmatprep.subr.bf16.mxu1 %v1353_v33 }
 0x590   :  { %v633_v44 = vpop.permute.xlu1 %632  ;;  %1356 = vmatpush3.bf16.msra.mxu1 %v1353_v33 }
 0x591   :  { %v639_v48 = vpop.permute.xlu0 %638  ;;  %v648_v51 = vsel %vm646_vm14, %v645_v50, %v633_v44 }
 0x592   :  { %v650_v49 = vsel %vm649_vm15, %v647_v46, %v639_v48 }
 0x593   :  { %1216 = vmatprep.mubr.msk.f32.mxu0 %vm51_vm0, %v650_v49 }
 0x594   :  { %v641_v52 = vpop.permute.xlu1 %640 }
 0x595   :  { %v651_v45 = vsel %vm649_vm15, %v648_v51, %v641_v52  ;;  %v891_v52 = vld [vmem:[#allocation5 + $0xd0] sm:$0xff] }
 0x596   :  { %1217 = vmatmul.mubr.msk.f32.vlgmr.msra.gmra.mrb[10].mxu0 %vm51_vm0, %v651_v45  ;;  %v892_v45 = vld [vmem:[#allocation5 + $0xd8] sm:$0xff] }
 0x597   :  { %1324 = vmatpush3.bf16.msra.mxu0 %v1321_v6 }
 0x598   :  { %1326 = vmatprep.subr.bf16.mxu0 %v1325_v9 }
 0x59b   :  { %1328 = vmatpush3.bf16.msra.mxu0 %v1325_v9 }
 0x669   :  { %v1218_v54 = vpop.f32.mrb[10].mxu0 }
 0x66a   :  { %v739_v47 = vadd.f32 %v1218_v54, %v1062_v53  ;;  %v733_v55 = vpop.f32.mrb[11].mxu0  ;;  %v1067_v54 = vld [vmem:[#allocation5 + $0xe4] ss:$0 sm:$0xff] }
 0x66b   :  { %v734_v56 = vadd.f32 %v1062_v53, %v733_v55  ;;  %v1357_v53 = vpack.c.bf16 %v892_v45, %v891_v52 }
 0x66c   :  { %v743_v57 = vadd.f32 %v739_v47, %v1588_v7 }
 0x66d   :  { %v742_v58 = vadd.f32 %v734_v56, %v1584_v5  ;;  %1358 = vmatprep.subr.bf16.mxu1 %v1357_v53 }
 0x66e   :  { %v749_v59 = vsel %vm51_vm0, %v743_v57, 0.0  ;;  %1360 = vmatpush3.bf16.msra.mxu1 %v1357_v53 }
 0x66f   :  { %750 = vadd.xlane.f32.xlu1 %v749_v59  ;;  %v746_v60 = vsel %vm51_vm0, %v742_v58, 0.0 }
 0x670   :  { %747 = vadd.xlane.f32.xlu0 %v746_v60  ;;  %v1070_v60 = vld [vmem:[#allocation5 + $0xe5] ss:$0 sm:$0xff] }
 0x6fc   :  { %v751_v61 = vpop.xlane.xlu1 %750 }
 0x6fd   :  { %v754_v18 = vmul.f32 0.03125, %v751_v61  ;;  %v748_v62 = vpop.xlane.xlu0 %747 }
 0x6fe   :  { %v753_v63 = vmul.f32 0.03125, %v748_v62 }
 0x6ff   :  { %v1833_v22 = vsub.f32 %v743_v57, %v754_v18 }
 0x700   :  { %v755_v0 = vsub.f32 %v742_v58, %v753_v63 }
 0x701   :  { %v758_v7 = vmul.f32 %v1833_v22, %v1833_v22 }
 0x702   :  { %v757_v2 = vmul.f32 %v755_v0, %v755_v0 }
 0x703   :  { %v762_v5 = vsel %vm51_vm0, %v758_v7, 0.0 }
 0x704   :  { %v759_v19 = vsel %vm51_vm0, %v757_v2, 0.0 }
 0x705   :  { %760 = vadd.xlane.f32.xlu0 %v759_v19 }
 0x709   :  { %763 = vadd.xlane.f32.xlu0 %v762_v5 }
 0x792   :  { %v761_v34 = vpop.xlane.xlu0 %760 }
 0x793   :  { %v765_v35 = vmul.f32 0.03125, %v761_v34 }
 0x795   :  { %v767_v36 = vadd.f32 1e-05, %v765_v35 }
 0x796   :  { %v764_v37 = vpop.xlane.xlu0 %763 }
 0x797   :  { %1446 = vrsqrt.f32 %v767_v36  ;;  %v766_v38 = vmul.f32 0.03125, %v764_v37 }
 0x799   :  { %v768_v39 = vadd.f32 1e-05, %v766_v38 }
 0x79b   :  { %1448 = vrsqrt.f32 %v768_v39 }
 0x7a1   :  { %v1447_v40 = vpop.eup %1446 }
 0x7a2   :  { %v771_v42 = vmul.f32 %v1447_v40, %v755_v0 }
 0x7a4   :  { %v777_v44 = vmul.f32 %v1065_v41, %v771_v42 }
 0x7a5   :  { %v1449_v46 = vpop.eup %1448 }
 0x7a6   :  { %v772_v48 = vmul.f32 %v1449_v46, %v1833_v22  ;;  %v783_v49 = vadd.f32 %v1066_v43, %v777_v44 }
 0x7a8   :  { %v778_v50 = vmul.f32 %v1065_v41, %v772_v48  ;;  %1227 = vmatprep.mubr.msk.f32.mxu0 %vm51_vm0, %v783_v49 }
 0x7aa   :  { %v784_v51 = vadd.f32 %v1066_v43, %v778_v50 }
 0x7ac   :  { %1228 = vmatmul.mubr.msk.f32.vlgmr.msra.gmra.mrb[12].mxu0 %vm51_vm0, %v784_v51 }
 0x87f   :  { %v1229_v47 = vpop.f32.mrb[12].mxu0 }
 0x880   :  { %v872_v55 = vadd.f32 %v1229_v47, %v1067_v54  ;;  %v866_v56 = vpop.f32.mrb[13].mxu0 }
 0x881   :  { %v867_v57 = vadd.f32 %v1067_v54, %v866_v56 }
 0x882   :  { %v876_v59 = vmax.f32 %v872_v55, 0.0 }
 0x883   :  { %v875_v58 = vmax.f32 %v867_v57, 0.0 }
 0x885   :  { %1262 = vmatprep.mubr.f32.mxu1 %v875_v58 }
 0x886   :  { %1263 = vmatmul.mubr.f32.vlgmr.msra.gmra.mrb[8].mxu1 %v876_v59 }
 0x959   :  { %v1264_v61 = vpop.f32.mrb[8].mxu1 }
 0x95a   :  { %v970_v18 = vadd.f32 %v1264_v61, %v1070_v60  ;;  %v964_v62 = vpop.f32.mrb[9].mxu1 }
 0x95b   :  { %v965_v63 = vadd.f32 %v1070_v60, %v964_v62 }
 0x95c   :  { %v974_v22 = vadd.f32 %v970_v18, %v784_v51 }
 0x95d   :  { %v973_v0 = vadd.f32 %v965_v63, %v783_v49 }
 0x95e   :  { %v980_v2 = vsel %vm51_vm0, %v974_v22, 0.0 }
 0x95f   :  { %981 = vadd.xlane.f32.xlu0 %v980_v2  ;;  %v977_v19 = vsel %vm51_vm0, %v973_v0, 0.0 }
 0x960   :  { %978 = vadd.xlane.f32.xlu1 %v977_v19 }
 0x9ec   :  { %v982_v7 = vpop.xlane.xlu0 %981 }
 0x9ed   :  { %v984_v5 = vmul.f32 0.03125, %v982_v7  ;;  %v979_v3 = vpop.xlane.xlu1 %978 }
 0x9ee   :  { %v983_v4 = vmul.f32 0.03125, %v979_v3 }
 0x9ef   :  { %v986_v6 = vsub.f32 %v974_v22, %v984_v5 }
 0x9f0   :  { %v985_v8 = vsub.f32 %v973_v0, %v983_v4 }
 0x9f1   :  { %v988_v1 = vmul.f32 %v986_v6, %v986_v6 }
 0x9f2   :  { %v987_v9 = vmul.f32 %v985_v8, %v985_v8 }
 0x9f3   :  { %v992_v10 = vsel %vm51_vm0, %v988_v1, 0.0 }
 0x9f4   :  { %993 = vadd.xlane.f32.xlu0 %v992_v10  ;;  %v989_v11 = vsel %vm51_vm0, %v987_v9, 0.0 }
 0x9f5   :  { %990 = vadd.xlane.f32.xlu1 %v989_v11 }
 0xa81   :  { %v994_v12 = vpop.xlane.xlu0 %993 }
 0xa82   :  { %v996_v14 = vmul.f32 0.03125, %v994_v12  ;;  %v991_v15 = vpop.xlane.xlu1 %990 }
 0xa83   :  { %v995_v16 = vmul.f32 0.03125, %v991_v15 }
 0xa84   :  { %v998_v17 = vadd.f32 1e-05, %v996_v14 }
 0xa85   :  { %v997_v20 = vadd.f32 1e-05, %v995_v16 }
 0xa86   :  { %1450 = vrsqrt.f32 %v998_v17 }
 0xa87   :  { %1452 = vrsqrt.f32 %v997_v20 }
 0xa90   :  { %v1451_v23 = vpop.eup %1450 }
 0xa91   :  { %v1453_v13 = vpop.eup %1452  ;;  %v1002_v25 = vmul.f32 %v1451_v23, %v986_v6 }
 0xa92   :  { %v1001_v21 = vmul.f32 %v1453_v13, %v985_v8 }
 0xa93   :  { %v1008_v27 = vmul.f32 %v1071_v24, %v1002_v25 }
 0xa94   :  { %v1007_v28 = vmul.f32 %v1071_v24, %v1001_v21 }
 0xa95   :  { %v1014_v29 = vadd.f32 %v1072_v26, %v1008_v27 }
 0xa96   :  { %v1013_v30 = vadd.f32 %v1072_v26, %v1007_v28 }
 0xa97   :  { %1016 = vst.msk [vmem:[#allocation7 + $0x8] sm:$0xff] %vm51_vm0, %v1014_v29 }
 0xa98   :  { %1015 = vst.msk [vmem:[#allocation7] sm:$0xff] %vm51_vm0, %v1013_v30 }
 0xa99   :  { %1509 = shalt.err (!%p1506_p6)
}
 0xa9a   :  { %s1510_s17 = scalar_lea.hbm %s1865_s2, 256 }
 0xa9b   :  { %p1511_p7 = scmp.ne.s32.totalorder %s1865_s2, %s1510_s17  ;;  %p1514_p8 = scmp.lt.u32.totalorder %s1510_s17, %s1865_s2 }
 0xa9d   :  { %p1516_p9 = pnand %p1514_p8, %p1511_p7 }
 0xa9f   :  { %1519 = shalt.err (!%p1516_p9)
}
 0xaa0   :  { %1028 = dma.vmem_to_hbm [thread:$0]  %s1023_s13, 256, %s1865_s2, [#allocation4], %s1527_s19, %s1527_s19, %s1528_s20  }
 0xaa1   :  { %1524 = dma.done.wait [#allocation4], 256  }
 0xaa2   :  { %1525 = vsyncadd [#allocation4], 4294967040 }
 0xaa3   :  { %1032 = vsyncpa [#allocation3], 1 }
 0xaa4   :  { %1033 = vsyncpa [#allocation6], 1 }
 0xaa5   :  { %1034 = vsyncpa [#allocation4], 1 }

</bundles_post_ra>
